<compile_context>
chip_gen: v7x
topology: tpu7x:2x2x1
jax: 0.10.0
libtpu: 0.0.40
codegen_flags: <defaults>
</compile_context>

<pallas_src>
import functools
import math

import jax
import jax.numpy as jnp
from jax.experimental import pallas as pl
from jax.experimental.pallas import tpu as pltpu

EPS = 1e-5


def _block_kernel(x_ext_ref, x_center_ref, mask_ref,
                  w1_ref, g1_ref, b1_ref, w2_ref, g2_ref, b2_ref,
                  o_ref, col_ref, hext_ref,
                  *, nflat, pad, row_stride, inv_count, cp):
    mask = mask_ref[...]                                  # (1, nflat) f32, 1.0 on real pixels

    taps = tuple((dy, dx) for dy in (-1, 0, 1) for dx in (-1, 0, 1))

    def conv3x3(src_ref, w_ref):
        # im2col: 9 statically lane-shifted views of the bf16 source, stacked on sublanes,
        # then ONE bf16 x bf16 MXU matmul (K = 9*Cp) with f32 accumulation.
        for k, (dy, dx) in enumerate(taps):
            start = pad + dy * row_stride + dx            # static lane offset in the flat layout
            col_ref[pl.ds(k * cp, cp), :] = src_ref[:, pl.ds(start, nflat)]
        return jnp.dot(w_ref[...], col_ref[...], preferred_element_type=jnp.float32)

    def bn_affine(h, gamma, beta):
        # Training-mode BatchNorm2d (batch stats, biased variance) folded to a per-channel affine.
        # One-pass variance E[h^2] - mean^2 in f32 (precision contract; fine at these scales).
        hm = h * mask
        mean = jnp.sum(hm, axis=1, keepdims=True) * inv_count          # (Cp, 1)
        ex2 = jnp.sum(hm * h, axis=1, keepdims=True) * inv_count
        var = ex2 - mean * mean
        scale = gamma * jax.lax.rsqrt(var + EPS)
        shift = beta - mean * scale
        return h * scale + shift                                        # 1 mul + 1 add / element

    # conv1 -> bn1 -> relu ; re-zero image-pad pixels (REQUIRED so conv2 sees true zero padding)
    h1 = conv3x3(x_ext_ref, w1_ref)
    h1 = mask * jnp.maximum(bn_affine(h1, g1_ref[...], b1_ref[...]), 0.0)

    # stage h1 (bf16) for conv2; zero ONLY the two pad borders instead of the whole buffer
    hext_ref[:, pl.ds(0, pad)] = jnp.zeros((cp, pad), jnp.bfloat16)
    hext_ref[:, pl.ds(pad + nflat, pad)] = jnp.zeros((cp, pad), jnp.bfloat16)
    hext_ref[:, pl.ds(pad, nflat)] = h1.astype(jnp.bfloat16)

    # conv2 -> bn2 -> residual add (pad-ring pixels carry garbage; sliced away wrapper-side)
    h2 = bn_affine(conv3x3(hext_ref, w2_ref), g2_ref[...], b2_ref[...])
    o_ref[...] = x_center_ref[...] + h2


def resnet_basicblock_forward(x_nchw, params):
    w1, g1, b1, w2, g2, b2 = params                       # w: (Cp, 9*Cp) bf16; g/b: (Cp, 1) f32
    B, C, H, W = x_nchw.shape
    Cp = g1.shape[0]                                      # channels padded to a sublane multiple
    Hp, Wp = H + 2, W + 2
    nflat = B * Hp * Wp
    pad = ((Wp + 1 + 127) // 128) * 128                   # >= Wp+1, lane-aligned center slices

    # ---- wrapper-side layout plumbing only (no compute) ----
    x_p = jnp.pad(x_nchw, ((0, 0), (0, Cp - C), (1, 1), (1, 1)))       # (B, Cp, Hp, Wp)
    x_cf = jnp.transpose(x_p, (1, 0, 2, 3)).reshape(Cp, nflat)         # channels -> sublanes,
    x_center = x_cf                                                    # pixels   -> lanes
    x_ext = jnp.pad(x_cf, ((0, 0), (pad, pad))).astype(jnp.bfloat16)   # bf16 conv input

    yy = jax.lax.broadcasted_iota(jnp.int32, (Hp, Wp), 0)
    xx = jax.lax.broadcasted_iota(jnp.int32, (Hp, Wp), 1)
    m2 = ((yy >= 1) & (yy <= H) & (xx >= 1) & (xx <= W)).astype(jnp.float32)
    mask = jnp.tile(m2.reshape(1, Hp * Wp), (1, B))                    # (1, nflat)

    kernel = functools.partial(
        _block_kernel, nflat=nflat, pad=pad, row_stride=Wp,
        inv_count=1.0 / float(B * H * W), cp=Cp)

    vmem = pl.BlockSpec(memory_space=pltpu.MemorySpace.VMEM)
    out_cf = pl.pallas_call(
        kernel,
        out_shape=jax.ShapeDtypeStruct((Cp, nflat), jnp.float32),
        in_specs=[vmem] * 9,
        out_specs=vmem,
        scratch_shapes=[
            pltpu.VMEM((9 * Cp, nflat), jnp.bfloat16),        # im2col staging (reused by both convs)
            pltpu.VMEM((Cp, nflat + 2 * pad), jnp.bfloat16),  # zero-bordered h1 for conv2
        ],
        compiler_params=pltpu.CompilerParams(vmem_limit_bytes=32 * 1024 * 1024),
    )(x_ext, x_center, mask, w1, g1, b1, w2, g2, b2)

    out = out_cf[:C].reshape(C, B, Hp, Wp)[:, :, 1:H + 1, 1:W + 1]
    return jnp.transpose(out, (1, 0, 2, 3))


def init_params(key, planes):
    """Conv weights ~ U(-stdv, stdv) with fan-in planes*9 (PyTorch default); BN gamma=1, beta=0.
    Weights are stored pre-packed for the kernel: (Cp, 9*Cp) bf16, zero-padded channels."""
    k1, k2 = jax.random.split(key)
    Cp = max(8, ((planes + 7) // 8) * 8)
    stdv = 1.0 / math.sqrt(planes * 3 * 3)

    def make_w(k):
        taps = jax.random.uniform(k, (9, planes, planes), jnp.float32, -stdv, stdv)
        wt = jnp.transpose(taps, (2, 0, 1))                             # (cout, 9, cin)
        wt = jnp.pad(wt, ((0, Cp - planes), (0, 0), (0, Cp - planes)))
        return wt.reshape(Cp, 9 * Cp).astype(jnp.bfloat16)

    gamma = jnp.ones((Cp, 1), jnp.float32)
    beta = jnp.zeros((Cp, 1), jnp.float32)
    return (make_w(k1), gamma, beta, make_w(k2), gamma, beta)


def ref_forward(x, w1, g1, b1, w2, g2, b2):
    """Pure-JAX f32 reference (lax.conv), independent of the in-kernel shift/im2col trick."""
    C = x.shape[1]

    def conv(h, w2d):
        Cp = w2d.shape[0]
        wt = w2d.astype(jnp.float32).reshape(Cp, 3, 3, Cp)[:C, :, :, :C]  # (cout, kh, kw, cin)
        w_oihw = jnp.transpose(wt, (0, 3, 1, 2))
        return jax.lax.conv_general_dilated(
            h, w_oihw, window_strides=(1, 1), padding=((1, 1), (1, 1)),
            dimension_numbers=("NCHW", "OIHW", "NCHW"),
            precision=jax.lax.Precision.HIGHEST)

    def bn2d(h, gamma, beta):
        g = gamma[:C].reshape(1, C, 1, 1)
        b = beta[:C].reshape(1, C, 1, 1)
        mean = jnp.mean(h, axis=(0, 2, 3), keepdims=True)
        var = jnp.mean((h - mean) ** 2, axis=(0, 2, 3), keepdims=True)
        return (h - mean) * jax.lax.rsqrt(var + EPS) * g + b

    h = jnp.maximum(bn2d(conv(x, w1), g1, b1), 0.0)
    h = bn2d(conv(h, w2), g2, b2)
    return x + h


if __name__ == "__main__":
    key = jax.random.PRNGKey(0)
    kx, kp = jax.random.split(key)

    # inplanes == planes, stride == 1 (required by the module since downsample is None)
    B, C, H, W = 2, 4, 16, 16
    x = jax.random.normal(kx, (B, C, H, W), dtype=jnp.float32)
    params = init_params(kp, C)

    out = jax.block_until_ready(jax.jit(resnet_basicblock_forward)(x, params))
    assert out.shape == (B, C, H, W) and out.dtype == jnp.float32

    ref = jax.block_until_ready(ref_forward(x, *params))
    # bf16 activations at the MXU (with f32 accumulation / f32 elementwise) -> relaxed tolerance.
    assert bool(jnp.allclose(out, ref, atol=2.5e-2, rtol=2.5e-2)), float(jnp.max(jnp.abs(out - ref)))

    print("KERNEL_OK")
</pallas_src>

<mosaic_0001>
module attributes {stable_mosaic.version = 11 : i64} {
  func.func @_block_kernel(%arg0: memref<8x904xbf16, #tpu.memory_space<vmem>>, %arg1: memref<8x648xf32, #tpu.memory_space<vmem>>, %arg2: memref<1x648xf32, #tpu.memory_space<vmem>>, %arg3: memref<8x72xbf16, #tpu.memory_space<vmem>>, %arg4: memref<8x1xf32, #tpu.memory_space<vmem>>, %arg5: memref<8x1xf32, #tpu.memory_space<vmem>>, %arg6: memref<8x72xbf16, #tpu.memory_space<vmem>>, %arg7: memref<8x1xf32, #tpu.memory_space<vmem>>, %arg8: memref<8x1xf32, #tpu.memory_space<vmem>>, %arg9: memref<8x648xf32, #tpu.memory_space<vmem>>, %arg10: memref<72x648xbf16, #tpu.memory_space<vmem>>, %arg11: memref<8x904xbf16, #tpu.memory_space<vmem>>) attributes {dimension_semantics = [], scalar_prefetch = 0 : i64, scratch_operands = 2 : i64, tpu.core_type = #tpu.core_type<tc>} {
    %c0 = arith.constant 0 : index
    %c0_0 = arith.constant 0 : index
    %0 = vector.load %arg2[%c0, %c0_0] : memref<1x648xf32, #tpu.memory_space<vmem>>, vector<1x648xf32>
    %c0_1 = arith.constant 0 : index
    %c109 = arith.constant 109 : index
    %1 = vector.load %arg0[%c0_1, %c109] : memref<8x904xbf16, #tpu.memory_space<vmem>>, vector<8x648xbf16>
    %c0_2 = arith.constant 0 : index
    %c0_3 = arith.constant 0 : index
    %2 = vector.load %arg10[%c0_2, %c0_3] : memref<72x648xbf16, #tpu.memory_space<vmem>>, vector<8x648xbf16>
    tpu.vector_store %arg10[%c0_2, %c0_3], %1 {strides = array<i32>} : memref<72x648xbf16, #tpu.memory_space<vmem>>, vector<8x648xbf16>,
    %c0_4 = arith.constant 0 : index
    %c110 = arith.constant 110 : index
    %3 = vector.load %arg0[%c0_4, %c110] : memref<8x904xbf16, #tpu.memory_space<vmem>>, vector<8x648xbf16>
    %c8 = arith.constant 8 : index
    %c0_5 = arith.constant 0 : index
    %4 = vector.load %arg10[%c8, %c0_5] : memref<72x648xbf16, #tpu.memory_space<vmem>>, vector<8x648xbf16>
    tpu.vector_store %arg10[%c8, %c0_5], %3 {strides = array<i32>} : memref<72x648xbf16, #tpu.memory_space<vmem>>, vector<8x648xbf16>,
    %c0_6 = arith.constant 0 : index
    %c111 = arith.constant 111 : index
    %5 = vector.load %arg0[%c0_6, %c111] : memref<8x904xbf16, #tpu.memory_space<vmem>>, vector<8x648xbf16>
    %c16 = arith.constant 16 : index
    %c0_7 = arith.constant 0 : index
    %6 = vector.load %arg10[%c16, %c0_7] : memref<72x648xbf16, #tpu.memory_space<vmem>>, vector<8x648xbf16>
    tpu.vector_store %arg10[%c16, %c0_7], %5 {strides = array<i32>} : memref<72x648xbf16, #tpu.memory_space<vmem>>, vector<8x648xbf16>,
    %c0_8 = arith.constant 0 : index
    %c127 = arith.constant 127 : index
    %7 = vector.load %arg0[%c0_8, %c127] : memref<8x904xbf16, #tpu.memory_space<vmem>>, vector<8x648xbf16>
    %c24 = arith.constant 24 : index
    %c0_9 = arith.constant 0 : index
    %8 = vector.load %arg10[%c24, %c0_9] : memref<72x648xbf16, #tpu.memory_space<vmem>>, vector<8x648xbf16>
    tpu.vector_store %arg10[%c24, %c0_9], %7 {strides = array<i32>} : memref<72x648xbf16, #tpu.memory_space<vmem>>, vector<8x648xbf16>,
    %c0_10 = arith.constant 0 : index
    %c128 = arith.constant 128 : index
    %9 = vector.load %arg0[%c0_10, %c128] : memref<8x904xbf16, #tpu.memory_space<vmem>>, vector<8x648xbf16>
    %c32 = arith.constant 32 : index
    %c0_11 = arith.constant 0 : index
    %10 = vector.load %arg10[%c32, %c0_11] : memref<72x648xbf16, #tpu.memory_space<vmem>>, vector<8x648xbf16>
    tpu.vector_store %arg10[%c32, %c0_11], %9 {strides = array<i32>} : memref<72x648xbf16, #tpu.memory_space<vmem>>, vector<8x648xbf16>,
    %c0_12 = arith.constant 0 : index
    %c129 = arith.constant 129 : index
    %11 = vector.load %arg0[%c0_12, %c129] : memref<8x904xbf16, #tpu.memory_space<vmem>>, vector<8x648xbf16>
    %c40 = arith.constant 40 : index
    %c0_13 = arith.constant 0 : index
    %12 = vector.load %arg10[%c40, %c0_13] : memref<72x648xbf16, #tpu.memory_space<vmem>>, vector<8x648xbf16>
    tpu.vector_store %arg10[%c40, %c0_13], %11 {strides = array<i32>} : memref<72x648xbf16, #tpu.memory_space<vmem>>, vector<8x648xbf16>,
    %c0_14 = arith.constant 0 : index
    %c145 = arith.constant 145 : index
    %13 = vector.load %arg0[%c0_14, %c145] : memref<8x904xbf16, #tpu.memory_space<vmem>>, vector<8x648xbf16>
    %c48 = arith.constant 48 : index
    %c0_15 = arith.constant 0 : index
    %14 = vector.load %arg10[%c48, %c0_15] : memref<72x648xbf16, #tpu.memory_space<vmem>>, vector<8x648xbf16>
    tpu.vector_store %arg10[%c48, %c0_15], %13 {strides = array<i32>} : memref<72x648xbf16, #tpu.memory_space<vmem>>, vector<8x648xbf16>,
    %c0_16 = arith.constant 0 : index
    %c146 = arith.constant 146 : index
    %15 = vector.load %arg0[%c0_16, %c146] : memref<8x904xbf16, #tpu.memory_space<vmem>>, vector<8x648xbf16>
    %c56 = arith.constant 56 : index
    %c0_17 = arith.constant 0 : index
    %16 = vector.load %arg10[%c56, %c0_17] : memref<72x648xbf16, #tpu.memory_space<vmem>>, vector<8x648xbf16>
    tpu.vector_store %arg10[%c56, %c0_17], %15 {strides = array<i32>} : memref<72x648xbf16, #tpu.memory_space<vmem>>, vector<8x648xbf16>,
    %c0_18 = arith.constant 0 : index
    %c147 = arith.constant 147 : index
    %17 = vector.load %arg0[%c0_18, %c147] : memref<8x904xbf16, #tpu.memory_space<vmem>>, vector<8x648xbf16>
    %c64 = arith.constant 64 : index
    %c0_19 = arith.constant 0 : index
    %18 = vector.load %arg10[%c64, %c0_19] : memref<72x648xbf16, #tpu.memory_space<vmem>>, vector<8x648xbf16>
    tpu.vector_store %arg10[%c64, %c0_19], %17 {strides = array<i32>} : memref<72x648xbf16, #tpu.memory_space<vmem>>, vector<8x648xbf16>,
    %c0_20 = arith.constant 0 : index
    %c0_21 = arith.constant 0 : index
    %19 = vector.load %arg3[%c0_20, %c0_21] : memref<8x72xbf16, #tpu.memory_space<vmem>>, vector<8x72xbf16>
    %c0_22 = arith.constant 0 : index
    %c0_23 = arith.constant 0 : index
    %20 = vector.load %arg10[%c0_22, %c0_23] : memref<72x648xbf16, #tpu.memory_space<vmem>>, vector<72x648xbf16>
    %cst = arith.constant dense<0.000000e+00> : vector<8x648xf32>
    %21 = tpu.matmul %19, %20, %cst {dimension_numbers = #tpu.dot_dimension_numbers<[1], [0], [0], [1], [0, 0, 1, 1], [], []>} : vector<8x72xbf16>, vector<72x648xbf16>, vector<8x648xf32> -> vector<8x648xf32>
    %c0_24 = arith.constant 0 : index
    %c0_25 = arith.constant 0 : index
    %22 = vector.load %arg4[%c0_24, %c0_25] : memref<8x1xf32, #tpu.memory_space<vmem>>, vector<8x1xf32>
    %c0_26 = arith.constant 0 : index
    %c0_27 = arith.constant 0 : index
    %23 = vector.load %arg5[%c0_26, %c0_27] : memref<8x1xf32, #tpu.memory_space<vmem>>, vector<8x1xf32>
    %24 = vector.broadcast %0 : vector<1x648xf32> to vector<8x648xf32>
    %25 = arith.mulf %21, %24 : vector<8x648xf32>
    %cst_28 = arith.constant dense<0.000000e+00> : vector<8xf32>
    %26 = vector.multi_reduction <add>, %25, %cst_28 [1] : vector<8x648xf32> to vector<8xf32>
    %27 = vector.shape_cast %26 : vector<8xf32> to vector<8x1xf32>
    %cst_29 = arith.constant 0.001953125 : f32
    %28 = vector.broadcast %cst_29 : f32 to vector<8x1xf32>
    %29 = arith.mulf %27, %28 : vector<8x1xf32>
    %30 = arith.mulf %25, %21 : vector<8x648xf32>
    %cst_30 = arith.constant dense<0.000000e+00> : vector<8xf32>
    %31 = vector.multi_reduction <add>, %30, %cst_30 [1] : vector<8x648xf32> to vector<8xf32>
    %32 = vector.shape_cast %31 : vector<8xf32> to vector<8x1xf32>
    %cst_31 = arith.constant 0.001953125 : f32
    %33 = vector.broadcast %cst_31 : f32 to vector<8x1xf32>
    %34 = arith.mulf %32, %33 : vector<8x1xf32>
    %35 = arith.mulf %29, %29 : vector<8x1xf32>
    %36 = arith.subf %34, %35 : vector<8x1xf32>
    %cst_32 = arith.constant 9.99999974E-6 : f32
    %37 = vector.broadcast %cst_32 : f32 to vector<8x1xf32>
    %38 = arith.addf %36, %37 : vector<8x1xf32>
    %39 = math.rsqrt %38 : vector<8x1xf32>
    %40 = arith.mulf %22, %39 : vector<8x1xf32>
    %41 = arith.mulf %29, %40 : vector<8x1xf32>
    %42 = arith.subf %23, %41 : vector<8x1xf32>
    %43 = vector.broadcast %40 : vector<8x1xf32> to vector<8x648xf32>
    %44 = arith.mulf %21, %43 : vector<8x648xf32>
    %45 = vector.broadcast %42 : vector<8x1xf32> to vector<8x648xf32>
    %46 = arith.addf %44, %45 : vector<8x648xf32>
    %cst_33 = arith.constant 0.000000e+00 : f32
    %47 = vector.broadcast %cst_33 : f32 to vector<8x648xf32>
    %48 = arith.maximumf %46, %47 : vector<8x648xf32>
    %49 = vector.broadcast %0 : vector<1x648xf32> to vector<8x648xf32>
    %50 = arith.mulf %49, %48 : vector<8x648xf32>
    %cst_34 = arith.constant 0.000000e+00 : bf16
    %51 = vector.broadcast %cst_34 : bf16 to vector<8x128xbf16>
    %c0_35 = arith.constant 0 : index
    %c0_36 = arith.constant 0 : index
    %52 = vector.load %arg11[%c0_35, %c0_36] : memref<8x904xbf16, #tpu.memory_space<vmem>>, vector<8x128xbf16>
    tpu.vector_store %arg11[%c0_35, %c0_36], %51 {strides = array<i32>} : memref<8x904xbf16, #tpu.memory_space<vmem>>, vector<8x128xbf16>,
    %cst_37 = arith.constant 0.000000e+00 : bf16
    %53 = vector.broadcast %cst_37 : bf16 to vector<8x128xbf16>
    %c0_38 = arith.constant 0 : index
    %c776 = arith.constant 776 : index
    %54 = vector.load %arg11[%c0_38, %c776] : memref<8x904xbf16, #tpu.memory_space<vmem>>, vector<8x128xbf16>
    tpu.vector_store %arg11[%c0_38, %c776], %53 {strides = array<i32>} : memref<8x904xbf16, #tpu.memory_space<vmem>>, vector<8x128xbf16>,
    %55 = arith.truncf %50 : vector<8x648xf32> to vector<8x648xbf16>
    %c0_39 = arith.constant 0 : index
    %c128_40 = arith.constant 128 : index
    %56 = vector.load %arg11[%c0_39, %c128_40] : memref<8x904xbf16, #tpu.memory_space<vmem>>, vector<8x648xbf16>
    tpu.vector_store %arg11[%c0_39, %c128_40], %55 {strides = array<i32>} : memref<8x904xbf16, #tpu.memory_space<vmem>>, vector<8x648xbf16>,
    %c0_41 = arith.constant 0 : index
    %c109_42 = arith.constant 109 : index
    %57 = vector.load %arg11[%c0_41, %c109_42] : memref<8x904xbf16, #tpu.memory_space<vmem>>, vector<8x648xbf16>
    %c0_43 = arith.constant 0 : index
    %c0_44 = arith.constant 0 : index
    %58 = vector.load %arg10[%c0_43, %c0_44] : memref<72x648xbf16, #tpu.memory_space<vmem>>, vector<8x648xbf16>
    tpu.vector_store %arg10[%c0_43, %c0_44], %57 {strides = array<i32>} : memref<72x648xbf16, #tpu.memory_space<vmem>>, vector<8x648xbf16>,
    %c0_45 = arith.constant 0 : index
    %c110_46 = arith.constant 110 : index
    %59 = vector.load %arg11[%c0_45, %c110_46] : memref<8x904xbf16, #tpu.memory_space<vmem>>, vector<8x648xbf16>
    %c8_47 = arith.constant 8 : index
    %c0_48 = arith.constant 0 : index
    %60 = vector.load %arg10[%c8_47, %c0_48] : memref<72x648xbf16, #tpu.memory_space<vmem>>, vector<8x648xbf16>
    tpu.vector_store %arg10[%c8_47, %c0_48], %59 {strides = array<i32>} : memref<72x648xbf16, #tpu.memory_space<vmem>>, vector<8x648xbf16>,
    %c0_49 = arith.constant 0 : index
    %c111_50 = arith.constant 111 : index
    %61 = vector.load %arg11[%c0_49, %c111_50] : memref<8x904xbf16, #tpu.memory_space<vmem>>, vector<8x648xbf16>
    %c16_51 = arith.constant 16 : index
    %c0_52 = arith.constant 0 : index
    %62 = vector.load %arg10[%c16_51, %c0_52] : memref<72x648xbf16, #tpu.memory_space<vmem>>, vector<8x648xbf16>
    tpu.vector_store %arg10[%c16_51, %c0_52], %61 {strides = array<i32>} : memref<72x648xbf16, #tpu.memory_space<vmem>>, vector<8x648xbf16>,
    %c0_53 = arith.constant 0 : index
    %c127_54 = arith.constant 127 : index
    %63 = vector.load %arg11[%c0_53, %c127_54] : memref<8x904xbf16, #tpu.memory_space<vmem>>, vector<8x648xbf16>
    %c24_55 = arith.constant 24 : index
    %c0_56 = arith.constant 0 : index
    %64 = vector.load %arg10[%c24_55, %c0_56] : memref<72x648xbf16, #tpu.memory_space<vmem>>, vector<8x648xbf16>
    tpu.vector_store %arg10[%c24_55, %c0_56], %63 {strides = array<i32>} : memref<72x648xbf16, #tpu.memory_space<vmem>>, vector<8x648xbf16>,
    %c0_57 = arith.constant 0 : index
    %c128_58 = arith.constant 128 : index
    %65 = vector.load %arg11[%c0_57, %c128_58] : memref<8x904xbf16, #tpu.memory_space<vmem>>, vector<8x648xbf16>
    %c32_59 = arith.constant 32 : index
    %c0_60 = arith.constant 0 : index
    %66 = vector.load %arg10[%c32_59, %c0_60] : memref<72x648xbf16, #tpu.memory_space<vmem>>, vector<8x648xbf16>
    tpu.vector_store %arg10[%c32_59, %c0_60], %65 {strides = array<i32>} : memref<72x648xbf16, #tpu.memory_space<vmem>>, vector<8x648xbf16>,
    %c0_61 = arith.constant 0 : index
    %c129_62 = arith.constant 129 : index
    %67 = vector.load %arg11[%c0_61, %c129_62] : memref<8x904xbf16, #tpu.memory_space<vmem>>, vector<8x648xbf16>
    %c40_63 = arith.constant 40 : index
    %c0_64 = arith.constant 0 : index
    %68 = vector.load %arg10[%c40_63, %c0_64] : memref<72x648xbf16, #tpu.memory_space<vmem>>, vector<8x648xbf16>
    tpu.vector_store %arg10[%c40_63, %c0_64], %67 {strides = array<i32>} : memref<72x648xbf16, #tpu.memory_space<vmem>>, vector<8x648xbf16>,
    %c0_65 = arith.constant 0 : index
    %c145_66 = arith.constant 145 : index
    %69 = vector.load %arg11[%c0_65, %c145_66] : memref<8x904xbf16, #tpu.memory_space<vmem>>, vector<8x648xbf16>
    %c48_67 = arith.constant 48 : index
    %c0_68 = arith.constant 0 : index
    %70 = vector.load %arg10[%c48_67, %c0_68] : memref<72x648xbf16, #tpu.memory_space<vmem>>, vector<8x648xbf16>
    tpu.vector_store %arg10[%c48_67, %c0_68], %69 {strides = array<i32>} : memref<72x648xbf16, #tpu.memory_space<vmem>>, vector<8x648xbf16>,
    %c0_69 = arith.constant 0 : index
    %c146_70 = arith.constant 146 : index
    %71 = vector.load %arg11[%c0_69, %c146_70] : memref<8x904xbf16, #tpu.memory_space<vmem>>, vector<8x648xbf16>
    %c56_71 = arith.constant 56 : index
    %c0_72 = arith.constant 0 : index
    %72 = vector.load %arg10[%c56_71, %c0_72] : memref<72x648xbf16, #tpu.memory_space<vmem>>, vector<8x648xbf16>
    tpu.vector_store %arg10[%c56_71, %c0_72], %71 {strides = array<i32>} : memref<72x648xbf16, #tpu.memory_space<vmem>>, vector<8x648xbf16>,
    %c0_73 = arith.constant 0 : index
    %c147_74 = arith.constant 147 : index
    %73 = vector.load %arg11[%c0_73, %c147_74] : memref<8x904xbf16, #tpu.memory_space<vmem>>, vector<8x648xbf16>
    %c64_75 = arith.constant 64 : index
    %c0_76 = arith.constant 0 : index
    %74 = vector.load %arg10[%c64_75, %c0_76] : memref<72x648xbf16, #tpu.memory_space<vmem>>, vector<8x648xbf16>
    tpu.vector_store %arg10[%c64_75, %c0_76], %73 {strides = array<i32>} : memref<72x648xbf16, #tpu.memory_space<vmem>>, vector<8x648xbf16>,
    %c0_77 = arith.constant 0 : index
    %c0_78 = arith.constant 0 : index
    %75 = vector.load %arg6[%c0_77, %c0_78] : memref<8x72xbf16, #tpu.memory_space<vmem>>, vector<8x72xbf16>
    %c0_79 = arith.constant 0 : index
    %c0_80 = arith.constant 0 : index
    %76 = vector.load %arg10[%c0_79, %c0_80] : memref<72x648xbf16, #tpu.memory_space<vmem>>, vector<72x648xbf16>
    %cst_81 = arith.constant dense<0.000000e+00> : vector<8x648xf32>
    %77 = tpu.matmul %75, %76, %cst_81 {dimension_numbers = #tpu.dot_dimension_numbers<[1], [0], [0], [1], [0, 0, 1, 1], [], []>} : vector<8x72xbf16>, vector<72x648xbf16>, vector<8x648xf32> -> vector<8x648xf32>
    %c0_82 = arith.constant 0 : index
    %c0_83 = arith.constant 0 : index
    %78 = vector.load %arg7[%c0_82, %c0_83] : memref<8x1xf32, #tpu.memory_space<vmem>>, vector<8x1xf32>
    %c0_84 = arith.constant 0 : index
    %c0_85 = arith.constant 0 : index
    %79 = vector.load %arg8[%c0_84, %c0_85] : memref<8x1xf32, #tpu.memory_space<vmem>>, vector<8x1xf32>
    %80 = vector.broadcast %0 : vector<1x648xf32> to vector<8x648xf32>
    %81 = arith.mulf %77, %80 : vector<8x648xf32>
    %cst_86 = arith.constant dense<0.000000e+00> : vector<8xf32>
    %82 = vector.multi_reduction <add>, %81, %cst_86 [1] : vector<8x648xf32> to vector<8xf32>
    %83 = vector.shape_cast %82 : vector<8xf32> to vector<8x1xf32>
    %cst_87 = arith.constant 0.001953125 : f32
    %84 = vector.broadcast %cst_87 : f32 to vector<8x1xf32>
    %85 = arith.mulf %83, %84 : vector<8x1xf32>
    %86 = arith.mulf %81, %77 : vector<8x648xf32>
    %cst_88 = arith.constant dense<0.000000e+00> : vector<8xf32>
    %87 = vector.multi_reduction <add>, %86, %cst_88 [1] : vector<8x648xf32> to vector<8xf32>
    %88 = vector.shape_cast %87 : vector<8xf32> to vector<8x1xf32>
    %cst_89 = arith.constant 0.001953125 : f32
    %89 = vector.broadcast %cst_89 : f32 to vector<8x1xf32>
    %90 = arith.mulf %88, %89 : vector<8x1xf32>
    %91 = arith.mulf %85, %85 : vector<8x1xf32>
    %92 = arith.subf %90, %91 : vector<8x1xf32>
    %cst_90 = arith.constant 9.99999974E-6 : f32
    %93 = vector.broadcast %cst_90 : f32 to vector<8x1xf32>
    %94 = arith.addf %92, %93 : vector<8x1xf32>
    %95 = math.rsqrt %94 : vector<8x1xf32>
    %96 = arith.mulf %78, %95 : vector<8x1xf32>
    %97 = arith.mulf %85, %96 : vector<8x1xf32>
    %98 = arith.subf %79, %97 : vector<8x1xf32>
    %99 = vector.broadcast %96 : vector<8x1xf32> to vector<8x648xf32>
    %100 = arith.mulf %77, %99 : vector<8x648xf32>
    %101 = vector.broadcast %98 : vector<8x1xf32> to vector<8x648xf32>
    %102 = arith.addf %100, %101 : vector<8x648xf32>
    %c0_91 = arith.constant 0 : index
    %c0_92 = arith.constant 0 : index
    %103 = vector.load %arg1[%c0_91, %c0_92] : memref<8x648xf32, #tpu.memory_space<vmem>>, vector<8x648xf32>
    %104 = arith.addf %103, %102 : vector<8x648xf32>
    %c0_93 = arith.constant 0 : index
    %c0_94 = arith.constant 0 : index
    %105 = vector.load %arg9[%c0_93, %c0_94] : memref<8x648xf32, #tpu.memory_space<vmem>>, vector<8x648xf32>
    tpu.vector_store %arg9[%c0_93, %c0_94], %104 {strides = array<i32>} : memref<8x648xf32, #tpu.memory_space<vmem>>, vector<8x648xf32>,
    return
  }
}

</mosaic_0001>

<bundles_post_ra>
// kernel: resnet_basicblock_forward.1
= control target key start
LH: loop header
LB: loop body
LE: loop exit
PB: predicated region body
PF: predicated region fallthrough
CT: control target
= control target key end

     0   :  { %s1441_s11 = smov 18   ;;  %s1442_s12 = smov 19   ;;  %vm49_vm0 = vcmask 1043456   ;;  %vm62_vm1 = vcmask 64516   ;;  %v1448_v7 = vmov 0   ;;  %vm81_vm3 = vcmask 146432   ;;  %s1979_s0 = inlined_call_operand.vmem [shape: bf16[8,904], index: 0, kind: input, shape index: {}]   ;;  %s1980_s3 = inlined_call_operand.vmem [shape: bf16[8,72], index: 3, kind: input, shape index: {}]   ;;  %s1981_s2 = inlined_call_operand.vmem [shape: f32[1,648], index: 2, kind: input, shape index: {}]   ;;  %s1982_s4 = inlined_call_operand.vmem [shape: f32[8,1], index: 4, kind: input, shape index: {}]   ;;  %s1983_s5 = inlined_call_operand.vmem [shape: f32[8,1], index: 5, kind: input, shape index: {}]   ;;  %s1984_s6 = inlined_call_operand.vmem [shape: bf16[8,72], index: 6, kind: input, shape index: {}]   ;;  %s1985_s7 = inlined_call_operand.vmem [shape: f32[8,1], index: 7, kind: input, shape index: {}]   ;;  %s1986_s8 = inlined_call_operand.vmem [shape: f32[8,1], index: 8, kind: input, shape index: {}]   ;;  %s1987_s1 = inlined_call_operand.vmem [shape: f32[8,648], index: 1, kind: input, shape index: {}]   ;;  %s1988_s9 = inlined_call_operand.vmem [shape: f32[8,648], index: 9, kind: output, shape index: {}]  }
   0x1   :  { %v65_v0 = vld [vmem:[%s1979_s0] sm:$0xff]  ;;  %v66_v1 = vld [vmem:[%s1979_s0 + $0x8] sm:$0xff]  ;;  %s1443_s15 = smov 17   ;;  %s1444_s16 = smov 1   ;;  %v160_v4 = vld [vmem:[%s1979_s0 + $0x14] sm:$0xff]  ;;  %483 = vmatprep.mubr.bf16.mxu0 %v1448_v7  ;;  %524 = vmatprep.mubr.bf16.mxu1 %v1448_v7  ;;  %vm51_vm4 = vcmask 154624  }
   0x2   :  { %71 = vrot.lane.b32.xlu1 %v65_v0, %s1441_s11  ;;  %40 = vrot.lane.b32.xlu0 %v65_v0, %s1442_s12  ;;  %v1517_v2 = vld [vmem:[%s1979_s0 + $0xc] sm:$0xff]  ;;  %v1522_v3 = vld [vmem:[%s1979_s0 + $0x4] sm:$0xff]  ;;  %vm1529_vm2 = vmor %vm62_vm1, %vm49_vm0  ;;  %s1445_s23 = smov 127   ;;  %s1446_s24 = smov 111   ;;  %679 = vst [vmem:[#allocation3] sm:$0xf] %v1448_v7 }
   0x3   :  { %157 = vst.msk [vmem:[#allocation2 + $0x70] sm:$0xff] %vm1529_vm2, %v160_v4  ;;  %s1447_s25 = smov 110   ;;  %v67_v6 = vld [vmem:[%s1979_s0 + $0x10] sm:$0xff]  ;;  %1407 = vset.pattern.permute.xlu0 %v1448_v7  ;;  %1408 = vset.pattern.permute.xlu1 %v1448_v7  ;;  %s1449_s28 = smov 109   ;;  %v122_v8 = vld [vmem:[%s1979_s0 + $0x18] sm:$0xf] }
   0x4   :  { %vm108_vm5 = vcmask 138240   ;;  %vm140_vm6 = vcmask 7168   ;;  %vm174_vm7 = vcmask 1039360   ;;  %vm201_vm8 = vcmask 908288  }
   0x5   :  { %vm228_vm9 = vcmask 900096   ;;  %vm255_vm10 = vcmask 891904   ;;  %vm429_vm11 = vcmask 588800   ;;  %vm617_vm12 = vcmask 64512  }
   0x6   :  { %73 = vrot.lane.b32.xlu1 %v66_v1, %s1441_s11  ;;  %42 = vrot.lane.b32.xlu0 %v66_v1, %s1442_s12  ;;  %vm680_vm13 = vcmask 1043520  }
   0x7   :  { %vm681_vm14 = vmor %vm62_vm1, %vm680_vm13 }
   0x8   :  { %682 = vst.msk [vmem:[#allocation3 + $0x18] sm:$0xff] %vm681_vm14, %v1448_v7 }
   0xa   :  { %100 = vrot.lane.b32.xlu1 %v66_v1, %s1443_s15  ;;  %98 = vrot.lane.b32.xlu0 %v65_v0, %s1443_s15 }
   0xe   :  { %129 = vrot.lane.b32.xlu1 %v66_v1, %s1444_s16  ;;  %127 = vrot.lane.b32.xlu0 %v65_v0, %s1444_s16 }
  0x12   :  { %166 = vrot.lane.b32.xlu1 %v1517_v2, %s1445_s23  ;;  %164 = vrot.lane.b32.xlu0 %v1522_v3, %s1445_s23 }
  0x16   :  { %193 = vrot.lane.b32.xlu1 %v1517_v2, %s1446_s24  ;;  %191 = vrot.lane.b32.xlu0 %v1522_v3, %s1446_s24 }
  0x1a   :  { %220 = vrot.lane.b32.xlu1 %v1517_v2, %s1447_s25  ;;  %218 = vrot.lane.b32.xlu0 %v1522_v3, %s1447_s25 }
  0x1e   :  { %75 = vrot.lane.b32.xlu1 %v67_v6, %s1441_s11  ;;  %44 = vrot.lane.b32.xlu0 %v67_v6, %s1442_s12 }
  0x22   :  { %247 = vrot.lane.b32.xlu1 %v1517_v2, %s1449_s28  ;;  %245 = vrot.lane.b32.xlu0 %v1522_v3, %s1449_s28 }
  0x26   :  { %131 = vrot.lane.b32.xlu1 %v67_v6, %s1444_s16  ;;  %102 = vrot.lane.b32.xlu0 %v67_v6, %s1443_s15 }
  0x2a   :  { %168 = vrot.lane.b32.xlu1 %v160_v4, %s1445_s23  ;;  %133 = vrot.lane.b32.xlu0 %v122_v8, %s1444_s16 }
  0x2e   :  { %222 = vrot.lane.b32.xlu1 %v160_v4, %s1447_s25  ;;  %195 = vrot.lane.b32.xlu0 %v160_v4, %s1446_s24 }
  0x32   :  { %249 = vrot.lane.b32.xlu0 %v160_v4, %s1449_s28 }
  0x74   :  { %v72_v9 = vpop.permute.xlu1 %71  ;;  %v41_v10 = vpop.permute.xlu0 %40 }
  0x75   :  { %v77_v11 = vrot.slane %v72_v9, 4  ;;  %v46_v14 = vrot.slane %v41_v10, 4 }
  0x78   :  { %v1571_v12 = vpop.permute.xlu1 %73  ;;  %v1573_v13 = vpop.permute.xlu0 %42 }
  0x79   :  { %v78_v15 = vrot.slane %v1571_v12, 4  ;;  %v47_v16 = vrot.slane %v1573_v13, 4 }
  0x7b   :  { %v80_v17 = vsel %vm49_vm0, %v77_v11, %v78_v15  ;;  %v50_v18 = vsel %vm49_vm0, %v46_v14, %v47_v16 }
  0x7c   :  { %v82_v19 = vsel %vm81_vm3, %v72_v9, %v80_v17  ;;  %v52_v20 = vsel %vm51_vm4, %v41_v10, %v50_v18  ;;  %v1581_v21 = vpop.permute.xlu1 %100  ;;  %v99_v22 = vpop.permute.xlu0 %98 }
  0x7d   :  { %v105_v23 = vrot.slane %v1581_v21, 4  ;;  %v104_v24 = vrot.slane %v99_v22, 4  ;;  %v1321_v25 = vcombine.high %v52_v20, %v82_v19  ;;  %v1320_v26 = vcombine.low %v52_v20, %v82_v19 }
  0x7f   :  { %451 = vmatprep.subr.bf16.mxu0 %v1321_v25  ;;  %v107_v29 = vsel %vm49_vm0, %v104_v24, %v105_v23 }
  0x80   :  { %v1584_v27 = vpop.permute.xlu1 %129  ;;  %v128_v28 = vpop.permute.xlu0 %127  ;;  %452 = vmatpush1.bf16.msra.mxu0 %v1320_v26  ;;  %v109_v33 = vsel %vm108_vm5, %v99_v22, %v107_v29 }
  0x81   :  { %v136_v30 = vrot.slane %v1584_v27, 4  ;;  %v135_v31 = vrot.slane %v128_v28, 4 }
  0x83   :  { %v139_v32 = vsel %vm49_vm0, %v135_v31, %v136_v30 }
  0x84   :  { %v141_v34 = vsel %vm140_vm6, %v128_v28, %v139_v32  ;;  %v1595_v35 = vpop.permute.xlu1 %166  ;;  %v165_v36 = vpop.permute.xlu0 %164 }
  0x85   :  { %v171_v37 = vrot.slane %v1595_v35, 4  ;;  %v170_v38 = vrot.slane %v165_v36, 4  ;;  %v1327_v39 = vcombine.high %v109_v33, %v141_v34  ;;  %v1326_v40 = vcombine.low %v109_v33, %v141_v34 }
  0x87   :  { %v173_v41 = vsel %vm49_vm0, %v170_v38, %v171_v37  ;;  %453 = vmatprep.subr.bf16.mxu0 %v1327_v39 }
  0x88   :  { %v175_v42 = vsel %vm174_vm7, %v165_v36, %v173_v41  ;;  %v1602_v43 = vpop.permute.xlu1 %193  ;;  %v192_v44 = vpop.permute.xlu0 %191  ;;  %454 = vmatpush1.bf16.msra.mxu0 %v1326_v40 }
  0x89   :  { %v198_v45 = vrot.slane %v1602_v43, 4  ;;  %v197_v46 = vrot.slane %v192_v44, 4  ;;  %v1333_v47 = vcombine.high %v1522_v3, %v175_v42  ;;  %v1332_v48 = vcombine.low %v1522_v3, %v175_v42 }
  0x8b   :  { %455 = vmatprep.subr.bf16.mxu0 %v1333_v47  ;;  %v200_v51 = vsel %vm49_vm0, %v197_v46, %v198_v45 }
  0x8c   :  { %v1607_v49 = vpop.permute.xlu1 %220  ;;  %v219_v50 = vpop.permute.xlu0 %218  ;;  %456 = vmatpush1.bf16.msra.mxu0 %v1332_v48  ;;  %v202_v55 = vsel %vm201_vm8, %v192_v44, %v200_v51 }
  0x8d   :  { %v225_v52 = vrot.slane %v1607_v49, 4  ;;  %v224_v53 = vrot.slane %v219_v50, 4 }
  0x8f   :  { %v227_v54 = vsel %vm49_vm0, %v224_v53, %v225_v52 }
  0x90   :  { %v229_v56 = vsel %vm228_vm9, %v219_v50, %v227_v54  ;;  %v76_v57 = vpop.permute.xlu1 %75  ;;  %v45_v58 = vpop.permute.xlu0 %44 }
  0x91   :  { %v79_v59 = vrot.slane %v76_v57, 4  ;;  %v48_v60 = vrot.slane %v45_v58, 4  ;;  %v1339_v61 = vcombine.high %v202_v55, %v229_v56  ;;  %v1338_v62 = vcombine.low %v202_v55, %v229_v56 }
  0x93   :  { %v83_v63 = vsel %vm49_vm0, %v78_v15, %v79_v59  ;;  %v85_v0 = vsel %vm81_vm3, %v76_v57, %v79_v59  ;;  %v53_v1 = vsel %vm49_vm0, %v47_v16, %v48_v60  ;;  %v55_v3 = vsel %vm51_vm4, %v45_v58, %v48_v60  ;;  %457 = vmatprep.subr.bf16.mxu0 %v1339_v61 }
  0x94   :  { %v84_v4 = vsel %vm81_vm3, %v1571_v12, %v83_v63  ;;  %91 = vst.msk [vmem:[#allocation2 + $0x28] sm:$0xff] %vm1529_vm2, %v85_v0  ;;  %v54_v6 = vsel %vm51_vm4, %v1573_v13, %v53_v1  ;;  %64 = vst.msk [vmem:[#allocation2 + $0x10] sm:$0xff] %vm1529_vm2, %v55_v3  ;;  %v1630_v8 = vpop.permute.xlu1 %247  ;;  %v246_v9 = vpop.permute.xlu0 %245  ;;  %458 = vmatpush1.bf16.msra.mxu0 %v1338_v62 }
  0x95   :  { %v252_v10 = vrot.slane %v1630_v8, 4  ;;  %v251_v11 = vrot.slane %v246_v9, 4  ;;  %v1323_v14 = vcombine.high %v54_v6, %v84_v4  ;;  %v1322_v15 = vcombine.low %v54_v6, %v84_v4 }
  0x97   :  { %v254_v12 = vsel %vm49_vm0, %v251_v11, %v252_v10  ;;  %492 = vmatprep.subr.bf16.mxu1 %v1323_v14  ;;  %v577_v14 = vlaneseq }
  0x98   :  { %v256_v13 = vsel %vm255_vm10, %v246_v9, %v254_v12  ;;  %v132_v16 = vpop.permute.xlu1 %131  ;;  %v103_v17 = vpop.permute.xlu0 %102  ;;  %493 = vmatpush1.bf16.msra.mxu1 %v1322_v15 }
  0x99   :  { %v137_v18 = vrot.slane %v132_v16, 4  ;;  %v106_v19 = vrot.slane %v103_v17, 4  ;;  %v1345_v20 = vcombine.high %v256_v13, %v256_v13  ;;  %v1344_v22 = vcombine.low %v256_v13, %v256_v13  ;;  %v33_v13 = vld [vmem:[%s1981_s2] sm:$0x3f] }
  0x9a   :  { %v578_v15 = vshrl.u32 %v577_v14, 7 }
  0x9b   :  { %v142_v24 = vsel %vm49_vm0, %v136_v30, %v137_v18  ;;  %v110_v25 = vsel %vm49_vm0, %v105_v23, %v106_v19  ;;  %v112_v26 = vsel %vm108_vm5, %v103_v17, %v106_v19  ;;  %1350 = vmatprep.subr.msk.bf16.mxu0 %vm49_vm0, %v1345_v20  ;;  %v434_v28 = vsel %vm49_vm0, %v1344_v22, 0  ;;  %v1409_v29 = vld [vmem:[#allocation2 + $0x14] ss:$24 sps:$4 sm:$0xff]   ;;  %v1655_v23 = vld [vmem:[%s1980_s3] sm:$0xf] }
  0x9c   :  { %v143_v31 = vsel %vm140_vm6, %v1584_v27, %v142_v24  ;;  %v111_v32 = vsel %vm108_vm5, %v1581_v21, %v110_v25  ;;  %118 = vst.msk [vmem:[#allocation2 + $0x40] sm:$0xff] %vm1529_vm2, %v112_v26  ;;  %v169_v30 = vpop.permute.xlu1 %168  ;;  %v134_v33 = vpop.permute.xlu0 %133  ;;  %460 = vmatpush1.bf16.msra.mxu0 %v434_v28  ;;  %v1411_v39 = vld [vmem:[#allocation2 + $0x10] ss:$24 sps:$4 sm:$0xff]   ;;  %v579_v12 = vsub.s32 0, %v578_v15 }
  0x9d   :  { %v172_v34 = vrot.slane %v169_v30, 4  ;;  %v138_v36 = vrot.slane %v134_v33, 4  ;;  %533 = vmatprep.subr.bf16.mxu0 %v1409_v29  ;;  %v1329_v38 = vcombine.high %v111_v32, %v143_v31  ;;  %v1328_v27 = vcombine.low %v111_v32, %v143_v31 }
  0x9e   :  { %v1711_v17 = vrot.slane %v33_v13, %v579_v12  ;;  %v591_v33 = vsub.s32 3, %v578_v15 }
  0x9f   :  { %v176_v21 = vsel %vm49_vm0, %v171_v37, %v172_v34  ;;  %v178_v40 = vsel %vm174_vm7, %v169_v30, %v172_v34  ;;  %v144_v41 = vsel %vm49_vm0, %v137_v18, %v138_v36  ;;  %1351 = vmatmul.mubr.msk.bf16.vlgmr.msra.gmra.mrb[0].mxu0 %vm429_vm11, %v1655_v23  ;;  %494 = vmatprep.subr.bf16.mxu1 %v1329_v38  ;;  %v587_v30 = vsub.s32 2, %v578_v15 }
  0xa0   :  { %v177_v42 = vsel %vm174_vm7, %v1595_v35, %v176_v21  ;;  %184 = vst.msk [vmem:[#allocation2 + $0x88] sm:$0xff] %vm1529_vm2, %v178_v40  ;;  %v145_v44 = vsel %vm140_vm6, %v132_v16, %v144_v41  ;;  %v223_v46 = vpop.permute.xlu1 %222  ;;  %v196_v47 = vpop.permute.xlu0 %195  ;;  %495 = vmatpush1.bf16.msra.mxu1 %v1328_v27  ;;  %534 = vmatpush1.bf16.msra.mxu0 %v1411_v39  ;;  %v583_v16 = vsub.s32 1, %v578_v15 }
  0xa1   :  { %151 = vst.msk [vmem:[#allocation2 + $0x58] sm:$0xff] %vm1529_vm2, %v145_v44  ;;  %v226_v37 = vrot.slane %v223_v46, 4  ;;  %v199_v48 = vrot.slane %v196_v47, 4  ;;  %v1335_v50 = vcombine.high %v1517_v2, %v177_v42  ;;  %v1334_v51 = vcombine.low %v1517_v2, %v177_v42  ;;  %565 = vmatprep.mubr.bf16.mxu0 %v1448_v7 }
  0xa2   :  { %v1713_v18 = vrot.slane %v33_v13, %v583_v16  ;;  %v1727_v34 = vrot.slane %v33_v13, %v591_v33 }
  0xa3   :  { %v230_v35 = vsel %vm49_vm0, %v225_v52, %v226_v37  ;;  %v232_v53 = vsel %vm228_vm9, %v223_v46, %v226_v37  ;;  %v203_v54 = vsel %vm49_vm0, %v198_v45, %v199_v48  ;;  %v205_v55 = vsel %vm201_vm8, %v196_v47, %v199_v48  ;;  %496 = vmatprep.subr.bf16.mxu1 %v1335_v50 }
  0xa4   :  { %v231_v56 = vsel %vm228_vm9, %v1607_v49, %v230_v35  ;;  %238 = vst.msk [vmem:[#allocation2 + $0xb8] sm:$0xff] %vm1529_vm2, %v232_v53  ;;  %v204_v2 = vsel %vm201_vm8, %v1602_v43, %v203_v54  ;;  %211 = vst.msk [vmem:[#allocation2 + $0xa0] sm:$0xff] %vm1529_vm2, %v205_v55  ;;  %v250_v52 = vpop.permute.xlu0 %249  ;;  %497 = vmatpush1.bf16.msra.mxu1 %v1334_v51  ;;  %v595_v46 = vsub.s32 4, %v578_v15  ;;  %v599_v37 = vsub.s32 5, %v578_v15 }
  0xa5   :  { %v253_v57 = vrot.slane %v250_v52, 4  ;;  %v1341_v58 = vcombine.high %v204_v2, %v231_v56  ;;  %v1340_v45 = vcombine.low %v204_v2, %v231_v56 }
  0xa6   :  { %v1731_v51 = vrot.slane %v33_v13, %v595_v46  ;;  %v1733_v35 = vrot.slane %v33_v13, %v599_v37 }
  0xa7   :  { %v257_v59 = vsel %vm49_vm0, %v252_v10, %v253_v57  ;;  %v259_v49 = vsel %vm255_vm10, %v250_v52, %v253_v57  ;;  %v1415_v60 = vld [vmem:[#allocation2 + $0x74] ss:$24 sps:$4 sm:$0xff]   ;;  %498 = vmatprep.subr.bf16.mxu1 %v1341_v58  ;;  %v1417_v4 = vld [vmem:[#allocation2 + $0x70] ss:$24 sps:$4 sm:$0xff]  }
  0xa8   :  { %v258_v61 = vsel %vm255_vm10, %v1630_v8, %v257_v59  ;;  %265 = vst.msk [vmem:[#allocation2 + $0xd0] sm:$0xff] %vm1529_vm2, %v259_v49  ;;  %v1412_v43 = vld [vmem:[#allocation2 + $0x44] ss:$24 sps:$4 sm:$0xff]   ;;  %v1414_v62 = vld [vmem:[#allocation2 + $0x40] ss:$24 sps:$4 sm:$0xff]   ;;  %499 = vmatpush1.bf16.msra.mxu1 %v1340_v45 }
  0xa9   :  { %v1347_v63 = vcombine.high %v258_v61, %v258_v61  ;;  %v1346_v0 = vcombine.low %v258_v61, %v258_v61  ;;  %535 = vmatprep.subr.bf16.mxu0 %v1412_v43 }
  0xaa   :  { %536 = vmatpush1.bf16.msra.mxu0 %v1414_v62 }
  0xab   :  { %1352 = vmatprep.subr.msk.bf16.mxu1 %vm49_vm0, %v1347_v63  ;;  %v440_v1 = vsel %vm49_vm0, %v1346_v0, 0  ;;  %537 = vmatprep.subr.bf16.mxu0 %v1415_v60  ;;  %v1418_v3 = vld [vmem:[#allocation2 + $0xa4] ss:$24 sps:$4 sm:$0xff]   ;;  %v1420_v9 = vld [vmem:[#allocation2 + $0xa0] ss:$24 sps:$4 sm:$0xff]  }
  0xac   :  { %501 = vmatpush1.bf16.msra.mxu1 %v440_v1 }
  0xae   :  { %538 = vmatpush1.bf16.msra.mxu0 %v1417_v4 }
  0xaf   :  { %v293_v6 = vld [vmem:[#allocation2 + $0xd0] sm:$0xff]  ;;  %1353 = vmatmul.mubr.msk.bf16.vlgmr.msra.gmra.mrb[0].mxu1 %vm429_vm11, %v1655_v23  ;;  %539 = vmatprep.subr.bf16.mxu0 %v1418_v3 }
  0xb0   :  { %v1349_v8 = vcombine.high %v293_v6, %v293_v6  ;;  %1146 = vmatprep.mubr.bf16.mxu1 %v1448_v7  ;;  %v1348_v10 = vcombine.low %v293_v6, %v293_v6 }
  0xb2   :  { %540 = vmatpush1.bf16.msra.mxu0 %v1420_v9  ;;  %v446_v11 = vsel %vm49_vm0, %v1348_v10, 0 }
  0xb3   :  { %1354 = vmatprep.subr.msk.bf16.mxu0 %vm49_vm0, %v1349_v8  ;;  %v574_v8 = vld [vmem:[%s1982_s4] sm:$0xff] }
  0xb6   :  { %542 = vmatpush1.bf16.msra.mxu0 %v446_v11  ;;  %v575_v11 = vld [vmem:[%s1983_s5] sm:$0xff] }
  0xb9   :  { %1355 = vmatmul.mubr.msk.bf16.vlgmr.msra.gmra.mrb[4].mxu0 %vm429_vm11, %v1655_v23  ;;  %v1725_v23 = vrot.slane %v33_v13, %v587_v30 }
  0xba   :  { %1187 = vmatprep.mubr.bf16.mxu0 %v1448_v7 }
 0x172   :  { %v1715_v19 = vpop.f32.mrb[0].mxu0 }
 0x173   :  { %v607_v20 = vmul.f32 %v1711_v17, %v1715_v19  ;;  %v1719_v22 = vpop.f32.mrb[1].mxu0 }
 0x174   :  { %v608_v24 = vmul.f32 %v1713_v18, %v1719_v22  ;;  %v489_v25 = vpop.f32.mrb[2].mxu0 }
 0x175   :  { %v623_v26 = vmul.f32 %v607_v20, %v1715_v19  ;;  %v490_v28 = vpop.f32.mrb[3].mxu0 }
 0x176   :  { %v613_v29 = vadd.f32 %v608_v24, %v607_v20  ;;  %v624_v31 = vmul.f32 %v608_v24, %v1719_v22 }
 0x178   :  { %v629_v32 = vadd.f32 %v624_v31, %v623_v26 }
 0x182   :  { %v526_v36 = vpop.f32.mrb[0].mxu1 }
 0x183   :  { %v609_v38 = vmul.f32 %v1725_v23, %v526_v36  ;;  %v528_v27 = vpop.f32.mrb[1].mxu1 }
 0x184   :  { %v610_v39 = vmul.f32 %v1727_v34, %v528_v27  ;;  %v530_v21 = vpop.f32.mrb[2].mxu1 }
 0x185   :  { %v614_v40 = vadd.f32 %v613_v29, %v609_v38  ;;  %v625_v41 = vmul.f32 %v609_v38, %v526_v36  ;;  %v531_v42 = vpop.f32.mrb[3].mxu1 }
 0x186   :  { %v626_v44 = vmul.f32 %v610_v39, %v528_v27 }
 0x187   :  { %v630_v47 = vadd.f32 %v629_v32, %v625_v41  ;;  %v615_v48 = vadd.f32 %v614_v40, %v610_v39 }
 0x189   :  { %v631_v50 = vadd.f32 %v630_v47, %v626_v44 }
 0x18c   :  { %v567_v53 = vpop.f32.mrb[4].mxu0 }
 0x18d   :  { %v611_v54 = vmul.f32 %v1731_v51, %v567_v53  ;;  %v569_v55 = vpop.f32.mrb[5].mxu0 }
 0x18e   :  { %v612_v56 = vmul.f32 %v1733_v35, %v569_v55  ;;  %v571_v2 = vpop.f32.mrb[6].mxu0 }
 0x18f   :  { %v627_v52 = vmul.f32 %v611_v54, %v567_v53  ;;  %v572_v57 = vpop.f32.mrb[7].mxu0  ;;  %v616_v58 = vadd.f32 %v615_v48, %v611_v54 }
 0x190   :  { %v628_v45 = vmul.f32 %v612_v56, %v569_v55  ;;  %v618_v59 = vsel %vm617_vm12, %v612_v56, 0.0 }
 0x191   :  { %v619_v49 = vadd.f32 %v618_v59, %v616_v58  ;;  %v632_v60 = vadd.f32 %v631_v50, %v627_v52 }
 0x192   :  { %v633_v61 = vsel %vm617_vm12, %v628_v45, 0.0 }
 0x193   :  { %620 = vadd.xlane.f32.xlu1 %v619_v49  ;;  %v634_v43 = vadd.f32 %v633_v61, %v632_v60 }
 0x195   :  { %635 = vadd.xlane.f32.xlu0 %v634_v43 }
 0x220   :  { %v621_v62 = vpop.xlane.xlu1 %620 }
 0x221   :  { %v622_v63 = vmul.f32 0.001953125, %v621_v62 }
 0x222   :  { %v636_v0 = vpop.xlane.xlu0 %635 }
 0x223   :  { %v638_v1 = vmul.f32 %v622_v63, %v622_v63  ;;  %v637_v3 = vmul.f32 0.001953125, %v636_v0 }
 0x225   :  { %v639_v4 = vsub.f32 %v637_v3, %v638_v1 }
 0x227   :  { %v640_v6 = vadd.f32 1e-05, %v639_v4 }
 0x229   :  { %1437 = vrsqrt.f32 %v640_v6 }
 0x233   :  { %v1438_v9 = vpop.eup %1437 }
 0x234   :  { %v642_v10 = vmul.f32 %v1438_v9, %v574_v8 }
 0x236   :  { %647 = vperm.xlu0 %1407, %v642_v10   ;;  %v643_v14 = vmul.f32 %v642_v10, %v622_v63 }
 0x238   :  { %v644_v15 = vsub.f32 %v575_v11, %v643_v14 }
 0x23a   :  { %658 = vperm.xlu1 %1408, %v644_v15  }
 0x2b5   :  { %v648_v12 = vpop.permute.xlu0 %647 }
 0x2b6   :  { %v650_v13 = vmul.f32 %v648_v12, %v1715_v19  ;;  %v651_v16 = vmul.f32 %v648_v12, %v1719_v22  ;;  %v652_v20 = vmul.f32 %v648_v12, %v526_v36  ;;  %v653_v24 = vmul.f32 %v648_v12, %v528_v27 }
 0x2b7   :  { %v654_v25 = vmul.f32 %v648_v12, %v567_v53  ;;  %v655_v26 = vmul.f32 %v648_v12, %v569_v55 }
 0x2b9   :  { %v659_v28 = vpop.permute.xlu1 %658 }
 0x2ba   :  { %v661_v29 = vadd.f32 %v659_v28, %v650_v13  ;;  %v662_v31 = vadd.f32 %v659_v28, %v651_v16  ;;  %v663_v32 = vadd.f32 %v659_v28, %v652_v20  ;;  %v664_v30 = vadd.f32 %v659_v28, %v653_v24 }
 0x2bb   :  { %v665_v33 = vadd.f32 %v659_v28, %v654_v25  ;;  %v666_v38 = vadd.f32 %v659_v28, %v655_v26 }
 0x2bc   :  { %v667_v39 = vmax.f32 %v661_v29, 0.0  ;;  %v668_v21 = vmax.f32 %v662_v31, 0.0  ;;  %v669_v40 = vmax.f32 %v663_v32, 0.0  ;;  %v670_v41 = vmax.f32 %v664_v30, 0.0 }
 0x2bd   :  { %v671_v42 = vmax.f32 %v665_v33, 0.0  ;;  %v672_v44 = vmax.f32 %v666_v38, 0.0 }
 0x2be   :  { %v673_v19 = vmul.f32 %v667_v39, %v1711_v17  ;;  %v674_v22 = vmul.f32 %v668_v21, %v1713_v18  ;;  %v675_v36 = vmul.f32 %v669_v40, %v1725_v23  ;;  %v676_v27 = vmul.f32 %v670_v41, %v1727_v34 }
 0x2bf   :  { %v677_v46 = vmul.f32 %v671_v42, %v1731_v51  ;;  %v678_v47 = vmul.f32 %v672_v44, %v1733_v35 }
 0x2c0   :  { %v1755_v37 = vpack.c.bf16 %v674_v22, %v673_v19  ;;  %v1757_v48 = vpack.c.bf16 %v676_v27, %v675_v36 }
 0x2c1   :  { %v1397_v50 = vpack.c.bf16 %v678_v47, %v677_v46 }
 0x2c2   :  { %707 = vst [vmem:[#allocation3 + $0x4] sm:$0xff] %v1755_v37  ;;  %708 = vst [vmem:[#allocation3 + $0xc] sm:$0xff] %v1757_v48 }
 0x2c3   :  { %709 = vst.msk [vmem:[#allocation3 + $0x14] sm:$0xff] %vm1529_vm2, %v1397_v50 }
 0x2c9   :  { %v789_v53 = vld [vmem:[#allocation3 + $0x8] sm:$0xff]  ;;  %v710_v54 = vld [vmem:[#allocation3] sm:$0xff] }
 0x2ca   :  { %798 = vrot.lane.b32.xlu0 %v789_v53, %s1444_s16  ;;  %716 = vrot.lane.b32.xlu1 %v710_v54, %s1442_s12  ;;  %v828_v55 = vld [vmem:[#allocation3 + $0x14] sm:$0xff] }
 0x2cb   :  { %825 = vst.msk [vmem:[#allocation2 + $0x70] sm:$0xff] %vm1529_vm2, %v828_v55  ;;  %v738_v56 = vld [vmem:[#allocation3 + $0x10] sm:$0xff]  ;;  %v791_v2 = vld [vmem:[#allocation3 + $0x18] sm:$0xf] }
 0x2ce   :  { %834 = vrot.lane.b32.xlu0 %v1757_v48, %s1445_s23  ;;  %718 = vrot.lane.b32.xlu1 %v789_v53, %s1442_s12 }
 0x2d2   :  { %860 = vrot.lane.b32.xlu0 %v1757_v48, %s1446_s24  ;;  %742 = vrot.lane.b32.xlu1 %v710_v54, %s1441_s11 }
 0x2d6   :  { %886 = vrot.lane.b32.xlu0 %v1757_v48, %s1447_s25  ;;  %744 = vrot.lane.b32.xlu1 %v789_v53, %s1441_s11 }
 0x2da   :  { %746 = vrot.lane.b32.xlu0 %v738_v56, %s1441_s11  ;;  %768 = vrot.lane.b32.xlu1 %v710_v54, %s1443_s15 }
 0x2de   :  { %912 = vrot.lane.b32.xlu0 %v1757_v48, %s1449_s28  ;;  %770 = vrot.lane.b32.xlu1 %v789_v53, %s1443_s15 }
 0x2e2   :  { %800 = vrot.lane.b32.xlu0 %v738_v56, %s1444_s16  ;;  %796 = vrot.lane.b32.xlu1 %v710_v54, %s1444_s16 }
 0x2e6   :  { %836 = vrot.lane.b32.xlu0 %v828_v55, %s1445_s23  ;;  %832 = vrot.lane.b32.xlu1 %v1755_v37, %s1445_s23 }
 0x2ea   :  { %888 = vrot.lane.b32.xlu0 %v828_v55, %s1447_s25  ;;  %858 = vrot.lane.b32.xlu1 %v1755_v37, %s1446_s24 }
 0x2ee   :  { %884 = vrot.lane.b32.xlu1 %v1755_v37, %s1447_s25 }
 0x2f2   :  { %720 = vrot.lane.b32.xlu1 %v738_v56, %s1442_s12 }
 0x2f6   :  { %910 = vrot.lane.b32.xlu1 %v1755_v37, %s1449_s28 }
 0x2fa   :  { %772 = vrot.lane.b32.xlu1 %v738_v56, %s1443_s15 }
 0x2fe   :  { %802 = vrot.lane.b32.xlu1 %v791_v2, %s1444_s16 }
 0x302   :  { %862 = vrot.lane.b32.xlu1 %v828_v55, %s1446_s24 }
 0x306   :  { %914 = vrot.lane.b32.xlu1 %v828_v55, %s1449_s28 }
 0x33c   :  { %v799_v52 = vpop.permute.xlu0 %798  ;;  %v717_v57 = vpop.permute.xlu1 %716 }
 0x33d   :  { %v722_v59 = vrot.slane %v717_v57, 4  ;;  %v805_v32 = vrot.slane %v799_v52, 4 }
 0x340   :  { %v835_v58 = vpop.permute.xlu0 %834  ;;  %v1798_v45 = vpop.permute.xlu1 %718 }
 0x341   :  { %v723_v49 = vrot.slane %v1798_v45, 4  ;;  %v839_v21 = vrot.slane %v835_v58, 4 }
 0x343   :  { %v725_v60 = vsel %vm49_vm0, %v722_v59, %v723_v49 }
 0x344   :  { %v726_v61 = vsel %vm51_vm4, %v717_v57, %v725_v60  ;;  %v1805_v43 = vpop.permute.xlu0 %860  ;;  %v743_v62 = vpop.permute.xlu1 %742 }
 0x345   :  { %v748_v1 = vrot.slane %v743_v62, 4  ;;  %v865_v53 = vrot.slane %v1805_v43, 4 }
 0x348   :  { %v1807_v63 = vpop.permute.xlu0 %886  ;;  %v745_v0 = vpop.permute.xlu1 %744 }
 0x349   :  { %v749_v3 = vrot.slane %v745_v0, 4  ;;  %v891_v54 = vrot.slane %v1807_v63, 4 }
 0x34b   :  { %v751_v4 = vsel %vm49_vm0, %v748_v1, %v749_v3 }
 0x34c   :  { %v752_v6 = vsel %vm81_vm3, %v743_v62, %v751_v4  ;;  %v747_v8 = vpop.permute.xlu0 %746  ;;  %v769_v9 = vpop.permute.xlu1 %768 }
 0x34d   :  { %v750_v10 = vrot.slane %v747_v8, 4  ;;  %v1359_v11 = vcombine.low %v726_v61, %v752_v6  ;;  %v1360_v14 = vcombine.high %v726_v61, %v752_v6  ;;  %v774_v24 = vrot.slane %v769_v9, 4 }
 0x34f   :  { %v753_v15 = vsel %vm49_vm0, %v749_v3, %v750_v10  ;;  %v755_v12 = vsel %vm81_vm3, %v747_v8, %v750_v10  ;;  %1114 = vmatprep.subr.bf16.mxu1 %v1360_v14 }
 0x350   :  { %v1814_v13 = vsel %vm81_vm3, %v745_v0, %v753_v15  ;;  %761 = vst.msk [vmem:[#allocation2 + $0x28] sm:$0xff] %vm1529_vm2, %v755_v12  ;;  %v1818_v16 = vpop.permute.xlu0 %912  ;;  %v1820_v20 = vpop.permute.xlu1 %770  ;;  %1115 = vmatpush1.bf16.msra.mxu1 %v1359_v11 }
 0x351   :  { %v775_v25 = vrot.slane %v1820_v20, 4 }
 0x353   :  { %v777_v26 = vsel %vm49_vm0, %v774_v24, %v775_v25 }
 0x354   :  { %v778_v28 = vsel %vm108_vm5, %v769_v9, %v777_v26  ;;  %v1827_v29 = vpop.permute.xlu0 %800  ;;  %v797_v31 = vpop.permute.xlu1 %796  ;;  %v917_v26 = vrot.slane %v1818_v16, 4 }
 0x355   :  { %v806_v30 = vrot.slane %v1827_v29, 4  ;;  %v804_v33 = vrot.slane %v797_v31, 4 }
 0x357   :  { %v810_v38 = vsel %vm49_vm0, %v805_v32, %v806_v30  ;;  %v808_v39 = vsel %vm49_vm0, %v804_v33, %v805_v32 }
 0x358   :  { %v1835_v40 = vsel %vm140_vm6, %v799_v52, %v810_v38  ;;  %v809_v41 = vsel %vm140_vm6, %v797_v31, %v808_v39  ;;  %v837_v42 = vpop.permute.xlu0 %836  ;;  %v833_v44 = vpop.permute.xlu1 %832 }
 0x359   :  { %v840_v19 = vrot.slane %v837_v42, 4  ;;  %v838_v22 = vrot.slane %v833_v44, 4  ;;  %v1365_v36 = vcombine.low %v778_v28, %v809_v41  ;;  %v1366_v27 = vcombine.high %v778_v28, %v809_v41 }
 0x35b   :  { %v843_v46 = vsel %vm49_vm0, %v839_v21, %v840_v19  ;;  %v845_v47 = vsel %vm174_vm7, %v837_v42, %v840_v19  ;;  %v841_v50 = vsel %vm49_vm0, %v838_v22, %v839_v21  ;;  %1116 = vmatprep.subr.bf16.mxu1 %v1366_v27 }
 0x35c   :  { %v1844_v55 = vsel %vm174_vm7, %v835_v58, %v843_v46  ;;  %851 = vst.msk [vmem:[#allocation2 + $0x88] sm:$0xff] %vm1529_vm2, %v845_v47  ;;  %v842_v56 = vsel %vm174_vm7, %v833_v44, %v841_v50  ;;  %v889_v2 = vpop.permute.xlu0 %888  ;;  %v859_v52 = vpop.permute.xlu1 %858  ;;  %1117 = vmatpush1.bf16.msra.mxu1 %v1365_v36  ;;  %v930_v36 = vld [vmem:[%s1984_s6] sm:$0xf] }
 0x35d   :  { %v892_v57 = vrot.slane %v889_v2, 4  ;;  %v864_v59 = vrot.slane %v859_v52, 4  ;;  %v1371_v60 = vcombine.low %v1755_v37, %v842_v56  ;;  %v1372_v61 = vcombine.high %v1755_v37, %v842_v56 }
 0x35e   :  { %v1374_v50 = vcombine.high %v1757_v48, %v1844_v55 }
 0x35f   :  { %v895_v62 = vsel %vm49_vm0, %v891_v54, %v892_v57  ;;  %v897_v0 = vsel %vm228_vm9, %v889_v2, %v892_v57  ;;  %v867_v58 = vsel %vm49_vm0, %v864_v59, %v865_v53  ;;  %1118 = vmatprep.subr.bf16.mxu1 %v1372_v61 }
 0x360   :  { %v1858_v1 = vsel %vm228_vm9, %v1807_v63, %v895_v62  ;;  %903 = vst.msk [vmem:[#allocation2 + $0xb8] sm:$0xff] %vm1529_vm2, %v897_v0  ;;  %v868_v3 = vsel %vm201_vm8, %v859_v52, %v867_v58  ;;  %v885_v4 = vpop.permute.xlu1 %884  ;;  %1119 = vmatpush1.bf16.msra.mxu1 %v1371_v60 }
 0x361   :  { %v890_v37 = vrot.slane %v885_v4, 4 }
 0x363   :  { %v893_v6 = vsel %vm49_vm0, %v890_v37, %v891_v54  ;;  %v1431_v58 = vld [vmem:[#allocation2 + $0x74] ss:$24 sps:$4 sm:$0xff]  }
 0x364   :  { %v894_v8 = vsel %vm228_vm9, %v885_v4, %v893_v6  ;;  %v721_v9 = vpop.permute.xlu1 %720 }
 0x365   :  { %v724_v10 = vrot.slane %v721_v9, 4  ;;  %v1377_v11 = vcombine.low %v868_v3, %v894_v8  ;;  %v1378_v14 = vcombine.high %v868_v3, %v894_v8  ;;  %v1429_v3 = vld [vmem:[#allocation2 + $0x70] ss:$24 sps:$4 sm:$0xff]  }
 0x367   :  { %v727_v63 = vsel %vm49_vm0, %v723_v49, %v724_v10  ;;  %v729_v15 = vsel %vm51_vm4, %v721_v9, %v724_v10  ;;  %1120 = vmatprep.subr.bf16.mxu1 %v1378_v14 }
 0x368   :  { %v728_v12 = vsel %vm51_vm4, %v1798_v45, %v727_v63  ;;  %735 = vst.msk [vmem:[#allocation2 + $0x10] sm:$0xff] %vm1529_vm2, %v729_v15  ;;  %v911_v24 = vpop.permute.xlu1 %910  ;;  %1121 = vmatpush1.bf16.msra.mxu1 %v1377_v11 }
 0x369   :  { %v916_v28 = vrot.slane %v911_v24, 4  ;;  %v1361_v31 = vcombine.low %v728_v12, %v1814_v13  ;;  %v1362_v32 = vcombine.high %v728_v12, %v1814_v13 }
 0x36b   :  { %v919_v49 = vsel %vm49_vm0, %v916_v28, %v917_v26  ;;  %1155 = vmatprep.subr.bf16.mxu0 %v1362_v32 }
 0x36c   :  { %v920_v33 = vsel %vm255_vm10, %v911_v24, %v919_v49  ;;  %v773_v38 = vpop.permute.xlu1 %772  ;;  %1156 = vmatpush1.bf16.msra.mxu0 %v1361_v31 }
 0x36d   :  { %v776_v45 = vrot.slane %v773_v38, 4  ;;  %v1384_v39 = vcombine.high %v920_v33, %v920_v33  ;;  %v1383_v21 = vcombine.low %v920_v33, %v920_v33 }
 0x36f   :  { %v779_v41 = vsel %vm49_vm0, %v775_v25, %v776_v45  ;;  %v781_v42 = vsel %vm108_vm5, %v773_v38, %v776_v45  ;;  %1389 = vmatprep.subr.msk.bf16.mxu1 %vm49_vm0, %v1384_v39  ;;  %v1097_v13 = vsel %vm49_vm0, %v1383_v21, 0  ;;  %v1425_v44 = vld [vmem:[#allocation2 + $0x14] ss:$24 sps:$4 sm:$0xff]   ;;  %v1423_v47 = vld [vmem:[#allocation2 + $0x10] ss:$24 sps:$4 sm:$0xff]  }
 0x370   :  { %v780_v19 = vsel %vm108_vm5, %v1820_v20, %v779_v41  ;;  %787 = vst.msk [vmem:[#allocation2 + $0x40] sm:$0xff] %vm1529_vm2, %v781_v42  ;;  %v803_v22 = vpop.permute.xlu1 %802  ;;  %1123 = vmatpush1.bf16.msra.mxu1 %v1097_v13 }
 0x371   :  { %v807_v25 = vrot.slane %v803_v22, 4  ;;  %1196 = vmatprep.subr.bf16.mxu1 %v1425_v44  ;;  %v1367_v27 = vcombine.low %v780_v19, %v1835_v40  ;;  %v1368_v46 = vcombine.high %v780_v19, %v1835_v40 }
 0x373   :  { %v812_v20 = vsel %vm49_vm0, %v806_v30, %v807_v25  ;;  %1390 = vmatmul.mubr.msk.bf16.vlgmr.msra.gmra.mrb[4].mxu1 %vm429_vm11, %v930_v36  ;;  %1157 = vmatprep.subr.bf16.mxu0 %v1368_v46  ;;  %v1373_v30 = vcombine.low %v1757_v48, %v1844_v55 }
 0x374   :  { %v813_v54 = vsel %vm140_vm6, %v1827_v29, %v812_v20  ;;  %v863_v56 = vpop.permute.xlu1 %862  ;;  %1158 = vmatpush1.bf16.msra.mxu0 %v1367_v27  ;;  %1197 = vmatpush1.bf16.msra.mxu1 %v1423_v47 }
 0x375   :  { %819 = vst.msk [vmem:[#allocation2 + $0x58] sm:$0xff] %vm1529_vm2, %v813_v54  ;;  %v866_v40 = vrot.slane %v863_v56, 4  ;;  %1159 = vmatprep.subr.bf16.mxu0 %v1374_v50  ;;  %1228 = vmatprep.mubr.bf16.mxu1 %v1448_v7 }
 0x377   :  { %v869_v2 = vsel %vm49_vm0, %v865_v53, %v866_v40  ;;  %v871_v52 = vsel %vm201_vm8, %v863_v56, %v866_v40 }
 0x378   :  { %v870_v29 = vsel %vm201_vm8, %v1805_v43, %v869_v2  ;;  %877 = vst.msk [vmem:[#allocation2 + $0xa0] sm:$0xff] %vm1529_vm2, %v871_v52  ;;  %v915_v57 = vpop.permute.xlu1 %914  ;;  %1160 = vmatpush1.bf16.msra.mxu0 %v1373_v30 }
 0x379   :  { %v918_v59 = vrot.slane %v915_v57, 4  ;;  %v1379_v7 = vcombine.low %v870_v29, %v1858_v1  ;;  %v1380_v60 = vcombine.high %v870_v29, %v1858_v1  ;;  %v1237_v29 = vld [vmem:[%s1985_s7] sm:$0xff] }
 0x37b   :  { %v921_v48 = vsel %vm49_vm0, %v917_v26, %v918_v59  ;;  %v923_v55 = vsel %vm255_vm10, %v915_v57, %v918_v59  ;;  %1161 = vmatprep.subr.bf16.mxu0 %v1380_v60 }
 0x37c   :  { %v922_v53 = vsel %vm255_vm10, %v1818_v16, %v921_v48  ;;  %929 = vst.msk [vmem:[#allocation2 + $0xd0] sm:$0xff] %vm1529_vm2, %v923_v55  ;;  %v1426_v43 = vld [vmem:[#allocation2 + $0x40] ss:$24 sps:$4 sm:$0xff]   ;;  %v1428_v61 = vld [vmem:[#allocation2 + $0x44] ss:$24 sps:$4 sm:$0xff]   ;;  %1162 = vmatpush1.bf16.msra.mxu0 %v1379_v7 }
 0x37d   :  { %v1386_v62 = vcombine.high %v922_v53, %v922_v53  ;;  %v1385_v0 = vcombine.low %v922_v53, %v922_v53  ;;  %1198 = vmatprep.subr.bf16.mxu1 %v1428_v61  ;;  %v1238_v7 = vld [vmem:[%s1986_s8] sm:$0xff] }
 0x37e   :  { %1199 = vmatpush1.bf16.msra.mxu1 %v1426_v43 }
 0x37f   :  { %1391 = vmatprep.subr.msk.bf16.mxu0 %vm49_vm0, %v1386_v62  ;;  %v1103_v1 = vsel %vm49_vm0, %v1385_v0, 0  ;;  %1200 = vmatprep.subr.bf16.mxu1 %v1431_v58  ;;  %v1434_v4 = vld [vmem:[#allocation2 + $0xa4] ss:$24 sps:$4 sm:$0xff]   ;;  %v1432_v5 = vld [vmem:[#allocation2 + $0xa0] ss:$24 sps:$4 sm:$0xff]  }
 0x380   :  { %1164 = vmatpush1.bf16.msra.mxu0 %v1103_v1  ;;  %v1298_v0 = vld [vmem:[%s1987_s1] sm:$0xff] }
 0x382   :  { %1201 = vmatpush1.bf16.msra.mxu1 %v1429_v3  ;;  %v1299_v3 = vld [vmem:[%s1987_s1 + $0x8] sm:$0xff] }
 0x383   :  { %v957_v16 = vld [vmem:[#allocation2 + $0xd0] sm:$0xff]  ;;  %1392 = vmatmul.mubr.msk.bf16.vlgmr.msra.gmra.mrb[8].mxu0 %vm429_vm11, %v930_v36  ;;  %1202 = vmatprep.subr.bf16.mxu1 %v1434_v4 }
 0x384   :  { %v1388_v37 = vcombine.high %v957_v16, %v957_v16  ;;  %v1387_v6 = vcombine.low %v957_v16, %v957_v16  ;;  %v1300_v4 = vld [vmem:[%s1987_s1 + $0x10] sm:$0xff]  ;;  %v1301_v16 = vld [vmem:[%s1987_s1 + $0x18] sm:$0xff] }
 0x386   :  { %1203 = vmatpush1.bf16.msra.mxu1 %v1432_v5  ;;  %v1109_v8 = vsel %vm49_vm0, %v1387_v6, 0  ;;  %v1303_v6 = vld [vmem:[%s1987_s1 + $0x28] sm:$0xff] }
 0x387   :  { %1393 = vmatprep.subr.msk.bf16.mxu1 %vm49_vm0, %v1388_v37  ;;  %v1302_v37 = vld [vmem:[%s1987_s1 + $0x20] sm:$0xff] }
 0x38a   :  { %1205 = vmatpush1.bf16.msra.mxu1 %v1109_v8 }
 0x38d   :  { %1394 = vmatmul.mubr.msk.bf16.vlgmr.msra.gmra.mrb[8].mxu1 %vm429_vm11, %v930_v36 }
 0x446   :  { %v1148_v9 = vpop.f32.mrb[4].mxu1 }
 0x447   :  { %v1239_v10 = vmul.f32 %v1148_v9, %v1711_v17  ;;  %v1150_v11 = vpop.f32.mrb[5].mxu1 }
 0x448   :  { %v1240_v14 = vmul.f32 %v1150_v11, %v1713_v18  ;;  %v1152_v63 = vpop.f32.mrb[6].mxu1 }
 0x449   :  { %v1254_v15 = vmul.f32 %v1239_v10, %v1148_v9  ;;  %v1153_v12 = vpop.f32.mrb[7].mxu1 }
 0x44a   :  { %v1245_v24 = vadd.f32 %v1240_v14, %v1239_v10  ;;  %v1255_v26 = vmul.f32 %v1240_v14, %v1150_v11 }
 0x44c   :  { %v1260_v28 = vadd.f32 %v1255_v26, %v1254_v15 }
 0x456   :  { %v1189_v31 = vpop.f32.mrb[8].mxu0 }
 0x457   :  { %v1241_v32 = vmul.f32 %v1189_v31, %v1725_v23  ;;  %v1191_v49 = vpop.f32.mrb[9].mxu0 }
 0x458   :  { %v1242_v33 = vmul.f32 %v1191_v49, %v1727_v34  ;;  %v1193_v38 = vpop.f32.mrb[10].mxu0 }
 0x459   :  { %v1246_v45 = vadd.f32 %v1245_v24, %v1241_v32  ;;  %v1256_v39 = vmul.f32 %v1241_v32, %v1189_v31  ;;  %v1194_v21 = vpop.f32.mrb[11].mxu0 }
 0x45a   :  { %v1257_v17 = vmul.f32 %v1242_v33, %v1191_v49 }
 0x45b   :  { %v1261_v41 = vadd.f32 %v1260_v28, %v1256_v39  ;;  %v1247_v42 = vadd.f32 %v1246_v45, %v1242_v33 }
 0x45d   :  { %v1262_v18 = vadd.f32 %v1261_v41, %v1257_v17 }
 0x460   :  { %v1230_v13 = vpop.f32.mrb[8].mxu1 }
 0x461   :  { %v1243_v44 = vmul.f32 %v1230_v13, %v1731_v51  ;;  %v1232_v19 = vpop.f32.mrb[9].mxu1 }
 0x462   :  { %v1244_v22 = vmul.f32 %v1232_v19, %v1733_v35  ;;  %v1234_v36 = vpop.f32.mrb[10].mxu1 }
 0x463   :  { %v1258_v25 = vmul.f32 %v1243_v44, %v1230_v13  ;;  %v1235_v23 = vpop.f32.mrb[11].mxu1  ;;  %v1248_v27 = vadd.f32 %v1247_v42, %v1243_v44 }
 0x464   :  { %v1259_v46 = vmul.f32 %v1244_v22, %v1232_v19  ;;  %v1249_v34 = vsel %vm617_vm12, %v1244_v22, 0.0 }
 0x465   :  { %v1250_v47 = vadd.f32 %v1249_v34, %v1248_v27  ;;  %v1263_v20 = vadd.f32 %v1262_v18, %v1258_v25 }
 0x466   :  { %v1264_v50 = vsel %vm617_vm12, %v1259_v46, 0.0 }
 0x467   :  { %1251 = vadd.xlane.f32.xlu0 %v1250_v47  ;;  %v1265_v54 = vadd.f32 %v1264_v50, %v1263_v20 }
 0x469   :  { %1266 = vadd.xlane.f32.xlu1 %v1265_v54 }
 0x4f4   :  { %v1252_v56 = vpop.xlane.xlu0 %1251 }
 0x4f5   :  { %v1253_v40 = vmul.f32 0.001953125, %v1252_v56 }
 0x4f6   :  { %v1267_v51 = vpop.xlane.xlu1 %1266 }
 0x4f7   :  { %v1269_v30 = vmul.f32 %v1253_v40, %v1253_v40  ;;  %v1268_v2 = vmul.f32 0.001953125, %v1267_v51 }
 0x4f9   :  { %v1270_v35 = vsub.f32 %v1268_v2, %v1269_v30 }
 0x4fb   :  { %v1271_v52 = vadd.f32 1e-05, %v1270_v35 }
 0x4fd   :  { %1439 = vrsqrt.f32 %v1271_v52 }
 0x507   :  { %v1440_v57 = vpop.eup %1439 }
 0x508   :  { %v1273_v59 = vmul.f32 %v1440_v57, %v1237_v29 }
 0x50a   :  { %1278 = vperm.xlu0 %1407, %v1273_v59   ;;  %v1274_v60 = vmul.f32 %v1273_v59, %v1253_v40 }
 0x50c   :  { %v1275_v48 = vsub.f32 %v1238_v7, %v1274_v60 }
 0x50e   :  { %1289 = vperm.xlu1 %1408, %v1275_v48  }
 0x589   :  { %v1279_v55 = vpop.permute.xlu0 %1278 }
 0x58a   :  { %v1281_v53 = vmul.f32 %v1279_v55, %v1148_v9  ;;  %v1282_v43 = vmul.f32 %v1279_v55, %v1150_v11  ;;  %v1283_v61 = vmul.f32 %v1279_v55, %v1189_v31  ;;  %v1284_v62 = vmul.f32 %v1279_v55, %v1191_v49 }
 0x58b   :  { %v1285_v58 = vmul.f32 %v1279_v55, %v1230_v13  ;;  %v1286_v1 = vmul.f32 %v1279_v55, %v1232_v19 }
 0x58d   :  { %v1290_v5 = vpop.permute.xlu1 %1289 }
 0x58e   :  { %v1292_v8 = vadd.f32 %v1290_v5, %v1281_v53  ;;  %v1293_v9 = vadd.f32 %v1290_v5, %v1282_v43  ;;  %v1294_v10 = vadd.f32 %v1290_v5, %v1283_v61  ;;  %v1295_v11 = vadd.f32 %v1290_v5, %v1284_v62 }
 0x58f   :  { %v1296_v14 = vadd.f32 %v1290_v5, %v1285_v58  ;;  %v1297_v63 = vadd.f32 %v1290_v5, %v1286_v1 }
 0x590   :  { %v1304_v15 = vadd.f32 %v1298_v0, %v1292_v8  ;;  %v1305_v12 = vadd.f32 %v1299_v3, %v1293_v9  ;;  %v1306_v24 = vadd.f32 %v1300_v4, %v1294_v10  ;;  %v1307_v26 = vadd.f32 %v1301_v16, %v1295_v11 }
 0x591   :  { %v1308_v28 = vadd.f32 %v1302_v37, %v1296_v14  ;;  %v1309_v31 = vadd.f32 %v1303_v6, %v1297_v63 }
 0x592   :  { %1310 = vst [vmem:[%s1988_s9] sm:$0xff] %v1304_v15  ;;  %1311 = vst [vmem:[%s1988_s9 + $0x8] sm:$0xff] %v1305_v12 }
 0x593   :  { %1312 = vst [vmem:[%s1988_s9 + $0x10] sm:$0xff] %v1306_v24  ;;  %1313 = vst [vmem:[%s1988_s9 + $0x18] sm:$0xff] %v1307_v26 }
 0x594   :  { %1314 = vst [vmem:[%s1988_s9 + $0x20] sm:$0xff] %v1308_v28  ;;  %1315 = vst.msk [vmem:[%s1988_s9 + $0x28] sm:$0xff] %vm617_vm12, %v1309_v31 }

</bundles_post_ra>
